<compile_context>
chip_gen: v7x
topology: tpu7x:2x2x1
jax: 0.10.0
libtpu: 0.0.40
codegen_flags: <defaults>
</compile_context>

<pallas_src>
import functools

import jax
import jax.numpy as jnp
from jax.experimental import pallas as pl
from jax.experimental.pallas import tpu as pltpu


# ----------------------------------------------------------------------------
# Kernel
# ----------------------------------------------------------------------------
def _shuffle_kernel(x_ref, o_ref, *, scale, nc_b, oh_b, out_w):
    """One grid step.

    x_ref block: (nc_b, oh_b*scale, W)           -- nc_b input planes, oh_b output-row groups
    o_ref block: (nc_b*scale**2, oh_b*out_w)     -- lane-dense flattened output rows
    """
    s2 = scale * scale
    v = x_ref[...]                                       # (nc_b, oh_b*scale, W)
    # Split rows into (oh, sh) and columns into (ow, sw), then move (sh, sw)
    # in front of the spatial dims in ONE vectorized relayout (no per-(sh,sw)
    # strided gathers, no strided pl.ds).
    v = v.reshape(nc_b, oh_b, scale, out_w, scale)
    v = jnp.transpose(v, (0, 2, 4, 1, 3))                # (nc_b, scale, scale, oh_b, out_w)
    o_ref[...] = v.reshape(nc_b * s2, oh_b * out_w)


# ----------------------------------------------------------------------------
# Block-size selection (VMEM- and layout-aware)
# ----------------------------------------------------------------------------
def _divisors_desc(n):
    return [d for d in range(n, 0, -1) if n % d == 0]


def _valid_nc_blocks(nc, s2):
    # Output block second-minor dim is nc_b*s2: must be a multiple of 8 or full.
    return [d for d in _divisors_desc(nc) if (d * s2) % 8 == 0 or d == nc]


def _valid_oh_blocks(out_h, scale, out_w):
    out = []
    for d in _divisors_desc(out_h):
        sublane_ok = (d * scale) % 8 == 0 or d == out_h      # input block 2nd-minor
        lane_ok = (d * out_w) % 128 == 0 or d == out_h       # output block lane dim
        if sublane_ok and lane_ok:
            out.append(d)
    return out


def _pick_blocks(nc, out_h, scale, out_w, itemsize, max_block_bytes):
    s2 = scale * scale
    nc_cands = _valid_nc_blocks(nc, s2)          # always contains nc
    oh_cands = _valid_oh_blocks(out_h, scale, out_w)  # always contains out_h

    def blk_bytes(nc_b, oh_b):
        return nc_b * (oh_b * scale) * (out_w * scale) * itemsize

    # Pass 1: fit the budget AND keep >= 2 grid steps (so v7x's two TensorCores
    # both get work).  Pass 2: just fit the budget.
    for want_parallel in (True, False):
        for nc_b in nc_cands:
            for oh_b in oh_cands:
                steps = (nc // nc_b) * (out_h // oh_b)
                if want_parallel and steps < 2:
                    continue
                if blk_bytes(nc_b, oh_b) <= max_block_bytes:
                    return nc_b, oh_b
    # Nothing fits the budget: use the smallest valid block.
    return nc_cands[-1], oh_cands[-1]


# ----------------------------------------------------------------------------
# Wrapper
# ----------------------------------------------------------------------------
def downsampling_shuffle(x: jax.Array, scale: int, *,
                         nc_block: int | None = None,
                         oh_block: int | None = None,
                         max_block_bytes: int = 8 * 1024 * 1024) -> jax.Array:
    """Pallas implementation of DownsamplingShuffle.forward (NCHW)."""
    N, C, H, W = x.shape
    assert H % scale == 0, "Please Check input and scale"
    assert W % scale == 0, "Please Check input and scale"
    s2 = scale * scale
    out_h, out_w = H // scale, W // scale
    NC = N * C
    itemsize = jnp.dtype(x.dtype).itemsize

    auto_nc, auto_oh = _pick_blocks(NC, out_h, scale, out_w, itemsize, max_block_bytes)
    nc_b = nc_block if nc_block is not None else auto_nc
    oh_b = oh_block if oh_block is not None else auto_oh
    assert NC % nc_b == 0 and out_h % oh_b == 0

    x2 = x.reshape(NC, H, W)                      # free reshape in the wrapper

    grid = (NC // nc_b, out_h // oh_b)
    blk_bytes = nc_b * (oh_b * scale) * W * itemsize
    # in + out blocks, double-buffered, plus slack; keep within v7x's 64 MiB.
    vmem_limit = int(min(64 * 1024 * 1024,
                         max(32 * 1024 * 1024, 4 * blk_bytes + (2 << 20))))

    kernel = functools.partial(_shuffle_kernel, scale=scale, nc_b=nc_b,
                               oh_b=oh_b, out_w=out_w)

    out2 = pl.pallas_call(
        kernel,
        out_shape=jax.ShapeDtypeStruct((NC * s2, out_h * out_w), x.dtype),
        grid=grid,
        in_specs=[
            pl.BlockSpec((nc_b, oh_b * scale, W), lambda i, j: (i, j, 0)),
        ],
        out_specs=pl.BlockSpec((nc_b * s2, oh_b * out_w), lambda i, j: (i, j)),
        compiler_params=pltpu.CompilerParams(
            dimension_semantics=("parallel", "parallel"),
            vmem_limit_bytes=vmem_limit,
        ),
        cost_estimate=pl.CostEstimate(
            flops=0, transcendentals=0,
            bytes_accessed=2 * x.size * itemsize),
    )(x2)

    return out2.reshape(N, C * s2, out_h, out_w)   # free reshape in the wrapper


def downsampling_shuffle_ref(x: jax.Array, scale: int) -> jax.Array:
    """Pure-JAX reference mirroring the PyTorch view/permute/view."""
    N, C, H, W = x.shape
    oh, ow = H // scale, W // scale
    xv = x.reshape(N, C, oh, scale, ow, scale)
    xv = jnp.transpose(xv, (0, 1, 3, 5, 2, 4))
    return xv.reshape(N, C * scale * scale, oh, ow)


if __name__ == "__main__":
    root = jax.random.PRNGKey(0)
    k1, k2, k3 = jax.random.split(root, 3)

    # Case 1: canonical small shape (auto block selection -> grid (2, 1)).
    scale = 2
    N, C, H, W = 2, 4, 16, 16
    x = jax.random.normal(k1, (N, C, H, W), dtype=jnp.float32)
    out = jax.block_until_ready(downsampling_shuffle(x, scale))
    ref = downsampling_shuffle_ref(x, scale)
    assert out.shape == (N, C * scale * scale, H // scale, W // scale), out.shape
    assert out.dtype == x.dtype
    assert jnp.array_equal(out, ref), "case 1: Pallas output does not match reference"

    # Case 2: force channel-block + row-block tiling (grid (1, 2)) to exercise
    # the H-tiled path used for large images / v7x VMEM budgeting.
    x2 = jax.random.normal(k2, (1, 2, 32, 32), dtype=jnp.float32)
    out2 = jax.block_until_ready(
        downsampling_shuffle(x2, 2, nc_block=2, oh_block=8))
    assert jnp.array_equal(out2, downsampling_shuffle_ref(x2, 2)), \
        "case 2: Pallas output does not match reference"

    # Case 3: scale=4, bf16 (sub-32-bit dtype, larger channel fan-out).
    x3 = jax.random.normal(k3, (2, 3, 16, 16), dtype=jnp.bfloat16)
    out3 = jax.block_until_ready(downsampling_shuffle(x3, 4))
    assert out3.shape == (2, 3 * 16, 4, 4)
    assert jnp.array_equal(out3, downsampling_shuffle_ref(x3, 4)), \
        "case 3: Pallas output does not match reference"

    print("KERNEL_OK")
</pallas_src>

<mosaic_0001>
module attributes {stable_mosaic.version = 11 : i64} {
  func.func @_shuffle_kernel(%arg0: i32, %arg1: i32, %arg2: memref<4x16x16xf32, #tpu.memory_space<vmem>>, %arg3: memref<16x64xf32, #tpu.memory_space<vmem>>) attributes {dimension_semantics = [#tpu.dimension_semantics<parallel>, #tpu.dimension_semantics<parallel>], iteration_bounds = array<i64: 2, 1>, scalar_prefetch = 0 : i64, scratch_operands = 0 : i64, tpu.core_type = #tpu.core_type<tc>, window_params = [{transform_indices = @transform_0, window_bounds = array<i64: 4, 16, 16>}, {transform_indices = @transform_1, window_bounds = array<i64: 16, 64>}]} {
    %c0 = arith.constant 0 : index
    %c0_0 = arith.constant 0 : index
    %c0_1 = arith.constant 0 : index
    %0 = vector.load %arg2[%c0, %c0_0, %c0_1] : memref<4x16x16xf32, #tpu.memory_space<vmem>>, vector<4x16x16xf32>
    %1 = vector.shape_cast %0 : vector<4x16x16xf32> to vector<4x8x2x8x2xf32>
    %2 = tpu.transpose %1, [0, 2, 4, 1, 3] : vector<4x8x2x8x2xf32> -> vector<4x2x2x8x8xf32>
    %3 = vector.shape_cast %2 : vector<4x2x2x8x8xf32> to vector<16x64xf32>
    %c0_2 = arith.constant 0 : index
    %c0_3 = arith.constant 0 : index
    %4 = vector.load %arg3[%c0_2, %c0_3] : memref<16x64xf32, #tpu.memory_space<vmem>>, vector<16x64xf32>
    tpu.vector_store %arg3[%c0_2, %c0_3], %3 {strides = array<i32>} : memref<16x64xf32, #tpu.memory_space<vmem>>, vector<16x64xf32>,
    return
  }
  func.func @transform_0(%arg0: i32, %arg1: i32) -> (i32, i32, i32) {
    %c0_i32 = arith.constant 0 : i32
    %c0_i32_0 = arith.constant 0 : i32
    return %arg0, %arg1, %c0_i32 : i32, i32, i32
  }
  func.func @transform_1(%arg0: i32, %arg1: i32) -> (i32, i32) {
    %c0_i32 = arith.constant 0 : i32
    return %arg0, %arg1 : i32, i32
  }
}

</mosaic_0001>

<bundles_post_ra>
// kernel: tpu_custom_call.1
= control target key start
LH: loop header
LB: loop body
LE: loop exit
PB: predicated region body
PF: predicated region fallthrough
CT: control target
= control target key end

     0   :  { %6 = vsyncpa [#allocation3], 0  ;;  %s5485_s0 = inlined_call_operand.hbm [shape: f32[8,16,16], index: 0, kind: input, shape index: {}]   ;;  %s5486_s1 = inlined_call_operand.hbm [shape: f32[32,64], index: 1, kind: output, shape index: {}]  }
   0x1   :  { %8 = vsyncpa [#allocation3 + $0x1], 0 }
   0x2   :  { %9 = vsyncpa [#allocation4], 0 }
   0x3   :  { %11 = vsyncpa [#allocation4 + $0x1], 0  ;;  %s4592_s6 = smov 0   ;;  %s4594_s7 = smov 0  }
   0x4   :  { %s4596_s8 = smov 0   ;;  %s4598_s9 = smov 0  }
   0x5   :  { %s4600_s10 = smov 0   ;;  %s4602_s11 = smov 0  }
   0x6 LB: > { %s4330_s12 = sadd.s32 4294967295, %s4559_s11   ;;  %s4331_s13 = sadd.s32 4294967294, %s4559_s11   ;;  %s4559_s11 = sphi %s4602_s11, %s17_s11   ;;  %s4555_s10 = sphi %s4600_s10, %s5560_s10   ;;  %s4551_s9 = sphi %s4598_s9, %s5559_s9   ;;  %s4547_s8 = sphi %s4596_s8, %s5558_s8   ;;  %s4543_s7 = sphi %s4594_s7, %s5557_s7   ;;  %s4539_s6 = sphi %s4592_s6, %s5556_s6  }
   0x7   : > { %s29_s14 = sadd.s32 1, %s4555_s10  ;;  %s38_s15 = sadd.s32 1, %s4547_s8 }
   0x8   : > { %p31_p0 = scmp.ge.s32.totalorder %s29_s14, 2  ;;  %p45_p1 = scmp.ne.s32.totalorder %s4547_s8, %s4543_s7 }
   0x9   : > { %p46_p2 = scmp.eq.s32.totalorder %s4559_s11, 0  ;;  %p51_p3 = scmp.ne.s32.totalorder %s4543_s7, %s4539_s6 }
   0xa   : > { %s5562_s14 = smov (%p31_p0, %s29_s14), 0  ;;  %p52_p5 = scmp.eq.s32.totalorder %s4330_s12, 0 }
   0xb   : > { %p4633_p4 = por %p46_p2, %p45_p1  ;;  %s33_s17 = ssub.s32 %s4555_s10, %s5562_s14 }
   0xc   : > { %p77_p6 = scmp.eq.s32.totalorder %s4330_s12, 1  ;;  %p36_p7 = scmp.eq.s32.totalorder %s33_s17, 0 }
   0xd   : > { %p4639_p8 = por %p52_p5, %p51_p3  ;;  %p83_p10 = scmp.eq.s32.totalorder %s4331_s13, 1 }
   0xe   : > { %p4643_p9 = por %p77_p6, %p45_p1  ;;  %p4377_p13 = scmp.lt.s32.totalorder %s4559_s11, 2 }
   0xf   : > { %s4648_s20 = scalar_select %p36_p7, %s4547_s8, %s38_s15  }
  0x10   : > { %s5511_s19 = scalar_select %p4643_p9, 1, 0 }
  0x11   : > { %p4650_p11 = por %p83_p10, %p51_p3  ;;  %s103_s22 = sand.u32 1, %s4547_s8  }
  0x12   : > { %s4334_s23 = sshll.u32 %s103_s22, 6  ;;  %s4363_s24 = sshll.u32 %s4555_s10, 10 }
  0x13   : > { %s5512_s21 = scalar_select %p4650_p11, 1, 0 }
  0x14   : > { %s4661_s27 = scalar_lea.hbm %s5485_s0, %s4363_s24  ;;  %s107_s28 = scalar_lea.vmem [#allocation2], %s4334_s23 }
  0x15   : > { %s117_s29 = sshll.u32 %s107_s28, 4  ;;  %p4667_p0 = pnand %p4377_p13, %p4633_p4  ;;  %s4663_s29 = int_to_ptr.vmem [resolvable:$true] %s117_s29 }
  0x16   : > { %s4672_s2 = scalar_lea.sflag [#allocation3], %s103_s22  ;;  %s4447_s3 = scalar_lea.hbm %s4661_s27, 1024 }
  0x17   : > { %p4448_p2 = scmp.ne.s32.totalorder %s4661_s27, %s4447_s3  ;;  %p4449_p3 = pneg %p4667_p0 }
  0x18   : > { %s4452_s12 = scalar_lea.hbm %s5485_s0, 2048  ;;  %p4453_p4 = scmp.lt.u32.totalorder %s4661_s27, %s5485_s0 }
  0x19   : > { %p4450_p5 = pnand %p4449_p3, %p4448_p2  ;;  %p4454_p7 = scmp.lt.u32.totalorder %s4452_s12, %s4447_s3 }
  0x1a   : > { %p4456_p13 = scmp.lt.u32.totalorder %s4447_s3, %s4661_s27 }
  0x1b   : > { %p4451_p6 = pneg %p4450_p5  ;;  %p4455_p10 = por %p4454_p7, %p4453_p4 }
  0x1d   : > { %p4457_p12 = por %p4456_p13, %p4455_p10 }
  0x1f   : > { %p4458_p1 = pnand %p4457_p12, %p4451_p6 }
  0x21   : > { %4461 = shalt.err (!%p4458_p1)
}
  0x22   : > { %s4462_s16 = scalar_lea.vmem %s4663_s29, 1024  ;;  %s4561_s17 = smov [#allocation2]  }
  0x23   : > { %p4463_p2 = scmp.ne.s32.totalorder %s4663_s29, %s4462_s16  ;;  %s4467_s22 = sshll.u32 %s4561_s17, 4  ;;  %s4468_s22 = int_to_ptr.vmem [resolvable:$false] %s4467_s22 }
  0x24   : > { %s4469_s23 = scalar_lea.vmem %s4468_s22, 2048  ;;  %p4470_p9 = scmp.lt.s32.totalorder %s4663_s29, %s4468_s22 }
  0x25   : > { %p4465_p5 = pnand %p4463_p2, %p4449_p3  ;;  %p4471_p4 = scmp.lt.s32.totalorder %s4469_s23, %s4462_s16 }
  0x27   : > { %p4466_p11 = pneg %p4465_p5  ;;  %p4472_p7 = por %p4471_p4, %p4470_p9 }
  0x29   : > { %p4473_p10 = pnand %p4472_p7, %p4466_p11 }
  0x2b   : > { %4476 = shalt.err (!%p4473_p10)
}
  0x2c   : > { %s4562_s24 = smov 128   ;;  %s4563_s25 = smov 8  }
  0x2d   : > { %4372 = dma.hbm_to_vmem [thread:$0]  (!%p4667_p0), %s4661_s27, 1024, %s4663_s29, %s4672_s2, %s4562_s24, %s4562_s24, %s4563_s25  }
  0x2e   : > { %p125_p12 = scmp.lt.s32.totalorder %s4559_s11, 3  ;;  %p5514_p1 = scmp.ge.s32.totalorder %s4559_s11, 1 }
  0x30   : > { %p126_p3 = pnand %p5514_p1, %p125_p12 }
  0x32   : > { %129 = sbr.rel (%p126_p3) target bundleno = 701 (0x2bd), region = 24 }
  0x39   : > { %s4704_s26 = sand.u32 1, %s4543_s7  }
  0x3a   : > { %s4339_s28 = sshll.u32 %s4704_s26, 6  ;;  %s132_s3 = scalar_lea.sflag [#allocation3], %s4704_s26 }
  0x3b   : > { %s135_s4 = scalar_lea.vmem [#allocation2], %s4339_s28 }
  0x3c   : > { %4530 = dma.done.wait (%p4639_p8), %s132_s3, 1024  }
  0x3d   : > { %4532 = vsyncadd (%p4639_p8), %s132_s3, 4294966272  ;;  %v4712_v0 = vld [vmem:[%s135_s4 + $0x10] sm:$0xff]  ;;  %v4714_v1 = vld [vmem:[%s135_s4] sm:$0xff]  ;;  %s4564_s27 = smov 126   ;;  %s4565_s18 = smov 124   ;;  %v346_v52 = vlaneseq  ;;  %vm4205_vm0 = vcmask 64512  }
  0x3e   : > { %177 = vrot.lane.b32.xlu1 %v4712_v0, %s4564_s27  ;;  %173 = vrot.lane.b32.xlu0 %v4714_v1, %s4564_s27  ;;  %v4718_v2 = vld [vmem:[%s135_s4 + $0x18] sm:$0xff]  ;;  %v4720_v3 = vld [vmem:[%s135_s4 + $0x8] sm:$0xff]  ;;  %s4566_s29 = smov 122   ;;  %s4567_s30 = smov 120   ;;  %v4571_v50 = vmov 1983009808  }
  0x3f   : > { %v4724_v4 = vld [vmem:[%s135_s4 + $0x28] sm:$0xff]  ;;  %v4726_v5 = vld [vmem:[%s135_s4 + $0x20] sm:$0xff]  ;;  %v4730_v6 = vld [vmem:[%s135_s4 + $0x38] sm:$0xff]  ;;  %s4568_s2 = smov 118   ;;  %s4569_s5 = smov 116   ;;  %v344_v51 = vunpack.c.l.s4 %v4571_v50  ;;  %v347_v56 = vshrl.u32 %v346_v52, 7 }
  0x40   : > { %5515 = vst [vmem:[#allocation8_spill] sm:$0xff] %v4724_v4  ;;  %5516 = vst [vmem:[#allocation9_spill] sm:$0xff] %v4730_v6  ;;  %v4732_v7 = vld [vmem:[%s135_s4 + $0x30] sm:$0xff]  ;;  %s4570_s12 = smov 114   ;;  %v4572_v59 = vmov 1934713408  }
  0x41   : > { %5517 = vst [vmem:[#allocation10_spill] sm:$0xff] %v4732_v7  ;;  %v345_v55 = vunpack.c.0.s8 %v344_v51  ;;  %v408_v60 = vunpack.c.l.s4 %v4572_v59  ;;  %s4573_s13 = smov 8   ;;  %s4574_s15 = smov 24   ;;  %vm4208_vm1 = vcmask 130048   ;;  %vm4211_vm2 = vcmask 195584  }
  0x42   : > { %179 = vrot.lane.b32.xlu1 %v4718_v2, %s4564_s27  ;;  %175 = vrot.lane.b32.xlu0 %v4720_v3, %s4564_s27  ;;  %s4575_s16 = smov 16   ;;  %s4576_s17 = smov 32   ;;  %vm4214_vm3 = vcmask 261120   ;;  %vm4217_vm4 = vcmask 326656   ;;  %vm4220_vm5 = vcmask 392192   ;;  %vm4223_vm6 = vcmask 457728  }
  0x43   : > { %v4866_v63 = vsub.s32 %v345_v55, %v347_v56  ;;  %s4577_s22 = smov 40   ;;  %s4578_s23 = smov 48   ;;  %vm4226_vm7 = vcmask 523264  }
  0x44   : > { %s4579_s24 = smov 56   ;;  %s4340_s25 = sshll.u32 %s4704_s26, 4 }
  0x45   : > { %s153_s28 = scalar_lea.vmem [#allocation5], %s4340_s25  ;;  %s4364_s4 = sshll.u32 %s4551_s9, 8 }
  0x46   : > { %183 = vrot.lane.b32.xlu1 %v4724_v4, %s4564_s27  ;;  %181 = vrot.lane.b32.xlu0 %v4726_v5, %s4564_s27  ;;  %s4244_s3 = sshll.u32 %s153_s28, 4  ;;  %s4230_s9 = scalar_lea.sflag [#allocation4], %s4704_s26  ;;  %s5426_s3 = int_to_ptr.vmem [resolvable:$true] %s4244_s3 }
  0x47   : > { %p5553_p9 = scmp.ne.s32.totalorder %s5511_s19, 0 }
  0x4a   : > { %187 = vrot.lane.b32.xlu1 %v4730_v6, %s4564_s27  ;;  %185 = vrot.lane.b32.xlu0 %v4732_v7, %s4564_s27 }
  0x4e   : > { %199 = vrot.lane.b32.xlu1 %v4720_v3, %s4565_s18  ;;  %197 = vrot.lane.b32.xlu0 %v4714_v1, %s4565_s18 }
  0x52   : > { %203 = vrot.lane.b32.xlu1 %v4718_v2, %s4565_s18  ;;  %201 = vrot.lane.b32.xlu0 %v4712_v0, %s4565_s18 }
  0x56   : > { %207 = vrot.lane.b32.xlu1 %v4724_v4, %s4565_s18  ;;  %205 = vrot.lane.b32.xlu0 %v4726_v5, %s4565_s18 }
  0x5a   : > { %211 = vrot.lane.b32.xlu1 %v4730_v6, %s4565_s18  ;;  %209 = vrot.lane.b32.xlu0 %v4732_v7, %s4565_s18 }
  0x5e   : > { %223 = vrot.lane.b32.xlu1 %v4720_v3, %s4566_s29  ;;  %221 = vrot.lane.b32.xlu0 %v4714_v1, %s4566_s29 }
  0x62   : > { %227 = vrot.lane.b32.xlu1 %v4718_v2, %s4566_s29  ;;  %225 = vrot.lane.b32.xlu0 %v4712_v0, %s4566_s29 }
  0x66   : > { %231 = vrot.lane.b32.xlu1 %v4724_v4, %s4566_s29  ;;  %229 = vrot.lane.b32.xlu0 %v4726_v5, %s4566_s29 }
  0x6a   : > { %235 = vrot.lane.b32.xlu1 %v4730_v6, %s4566_s29  ;;  %233 = vrot.lane.b32.xlu0 %v4732_v7, %s4566_s29  ;;  %s5433_s29 = scalar_lea.hbm %s5486_s1, %s4364_s4 }
  0x6e   : > { %247 = vrot.lane.b32.xlu1 %v4720_v3, %s4567_s30  ;;  %245 = vrot.lane.b32.xlu0 %v4714_v1, %s4567_s30 }
  0x72   : > { %251 = vrot.lane.b32.xlu1 %v4718_v2, %s4567_s30  ;;  %249 = vrot.lane.b32.xlu0 %v4712_v0, %s4567_s30 }
  0x76   : > { %255 = vrot.lane.b32.xlu1 %v4724_v4, %s4567_s30  ;;  %253 = vrot.lane.b32.xlu0 %v4726_v5, %s4567_s30 }
  0x7a   : > { %259 = vrot.lane.b32.xlu1 %v4730_v6, %s4567_s30  ;;  %257 = vrot.lane.b32.xlu0 %v4732_v7, %s4567_s30  ;;  %s4477_s30 = scalar_lea.vmem %s5426_s3, 256 }
  0x7b   : > { %p4478_p8 = scmp.ne.s32.totalorder %s5426_s3, %s4477_s30 }
  0x7d   : > { %p4479_p11 = pnand %p4478_p8, %p5553_p9 }
  0x7e   : > { %271 = vrot.lane.b32.xlu1 %v4720_v3, %s4568_s2  ;;  %269 = vrot.lane.b32.xlu0 %v4714_v1, %s4568_s2 }
  0x7f   : > { %p4480_p0 = pneg %p4479_p11 }
  0x82   : > { %275 = vrot.lane.b32.xlu1 %v4718_v2, %s4568_s2  ;;  %273 = vrot.lane.b32.xlu0 %v4712_v0, %s4568_s2 }
  0x86   : > { %279 = vrot.lane.b32.xlu1 %v4724_v4, %s4568_s2  ;;  %277 = vrot.lane.b32.xlu0 %v4726_v5, %s4568_s2 }
  0x8a   : > { %283 = vrot.lane.b32.xlu1 %v4730_v6, %s4568_s2  ;;  %281 = vrot.lane.b32.xlu0 %v4732_v7, %s4568_s2  ;;  %s4580_s2 = smov [#allocation5]  }
  0x8e   : > { %295 = vrot.lane.b32.xlu1 %v4720_v3, %s4569_s5  ;;  %293 = vrot.lane.b32.xlu0 %v4714_v1, %s4569_s5 }
  0x92   : > { %299 = vrot.lane.b32.xlu1 %v4718_v2, %s4569_s5  ;;  %297 = vrot.lane.b32.xlu0 %v4712_v0, %s4569_s5 }
  0x96   : > { %303 = vrot.lane.b32.xlu1 %v4724_v4, %s4569_s5  ;;  %301 = vrot.lane.b32.xlu0 %v4726_v5, %s4569_s5 }
  0x9a   : > { %307 = vrot.lane.b32.xlu1 %v4730_v6, %s4569_s5  ;;  %305 = vrot.lane.b32.xlu0 %v4732_v7, %s4569_s5  ;;  %s4481_s5 = sshll.u32 %s4580_s2, 4  ;;  %s4482_s5 = int_to_ptr.vmem [resolvable:$false] %s4481_s5 }
  0x9b   : > { %p4484_p6 = scmp.lt.s32.totalorder %s5426_s3, %s4482_s5 }
  0x9e   : > { %319 = vrot.lane.b32.xlu1 %v4720_v3, %s4570_s12  ;;  %317 = vrot.lane.b32.xlu0 %v4714_v1, %s4570_s12 }
  0xa2   : > { %323 = vrot.lane.b32.xlu1 %v4718_v2, %s4570_s12  ;;  %321 = vrot.lane.b32.xlu0 %v4712_v0, %s4570_s12 }
  0xa6   : > { %327 = vrot.lane.b32.xlu1 %v4724_v4, %s4570_s12  ;;  %325 = vrot.lane.b32.xlu0 %v4726_v5, %s4570_s12 }
  0xaa   : > { %331 = vrot.lane.b32.xlu1 %v4730_v6, %s4570_s12  ;;  %329 = vrot.lane.b32.xlu0 %v4732_v7, %s4570_s12  ;;  %v409_v6 = vunpack.c.0.s8 %v408_v60  ;;  %s4483_s12 = scalar_lea.vmem %s4482_s5, 512 }
  0xab   : > { %p4485_p13 = scmp.lt.s32.totalorder %s4483_s12, %s4477_s30 }
  0xad   : > { %p4486_p2 = por %p4485_p13, %p4484_p6 }
  0xaf   : > { %p4487_p5 = pnand %p4486_p2, %p4480_p0 }
  0xb0   : > { %v4784_v8 = vpop.permute.xlu1 %177  ;;  %v4786_v9 = vpop.permute.xlu0 %173 }
  0xb4   : > { %v4788_v10 = vpop.permute.xlu1 %179  ;;  %v4790_v11 = vpop.permute.xlu0 %175 }
  0xb8   : > { %v4792_v12 = vpop.permute.xlu1 %183  ;;  %v4794_v13 = vpop.permute.xlu0 %181 }
  0xb9   : > { %5518 = vst [vmem:[#allocation11_spill] sm:$0xff] %v4792_v12 }
  0xbc   : > { %v4796_v14 = vpop.permute.xlu1 %187  ;;  %v4798_v15 = vpop.permute.xlu0 %185 }
  0xbd   : > { %5519 = vst [vmem:[#allocation12_spill] sm:$0xff] %v4796_v14  ;;  %5520 = vst [vmem:[#allocation13_spill] sm:$0xff] %v4798_v15 }
  0xc0   : > { %v4800_v16 = vpop.permute.xlu1 %199  ;;  %v198_v17 = vpop.permute.xlu0 %197 }
  0xc1   : > { %v341_v50 = vcombine.low %v4714_v1, %v198_v17  ;;  %v342_v51 = vcombine.high %v4714_v1, %v198_v17  ;;  %v477_v52 = vcombine.low %v4720_v3, %v4800_v16 }
  0xc3   : > { %v356_v1 = vrot.slane %v342_v51, %v4866_v63 }
  0xc4   : > { %v4802_v18 = vpop.permute.xlu1 %203  ;;  %v4804_v19 = vpop.permute.xlu0 %201 }
  0xc8   : > { %v4806_v20 = vpop.permute.xlu1 %207  ;;  %v4808_v21 = vpop.permute.xlu0 %205 }
  0xc9   : > { %5521 = vst [vmem:[#allocation14_spill] sm:$0xff] %v4806_v20 }
  0xcc   : > { %v4810_v22 = vpop.permute.xlu1 %211  ;;  %v4812_v23 = vpop.permute.xlu0 %209 }
  0xcd   : > { %5522 = vst [vmem:[#allocation15_spill] sm:$0xff] %v4810_v22  ;;  %5523 = vst [vmem:[#allocation16_spill] sm:$0xff] %v4812_v23 }
  0xd0   : > { %v4814_v24 = vpop.permute.xlu1 %223  ;;  %v222_v25 = vpop.permute.xlu0 %221 }
  0xd1   : > { %v357_v61 = vcombine.low %v4786_v9, %v222_v25  ;;  %v358_v62 = vcombine.high %v4786_v9, %v222_v25  ;;  %v478_v9 = vcombine.high %v4720_v3, %v4800_v16  ;;  %v349_v25 = vrot.slane %v341_v50, %v4866_v63 }
  0xd2   : > { %v493_v17 = vcombine.low %v4790_v11, %v4814_v24  ;;  %v494_v3 = vcombine.high %v4790_v11, %v4814_v24  ;;  %v4893_v16 = vsub.s32 %v409_v6, %v347_v56 }
  0xd3   : > { %v365_v59 = vrot.slane %v357_v61, %v4866_v63  ;;  %v4878_v22 = vrot.slane %v358_v62, %v4866_v63  ;;  %v4889_v62 = vrot.slane %v477_v52, %v4866_v63  ;;  %v4905_v6 = vrot.slane %v478_v9, %v4866_v63 }
  0xd4   : > { %v4816_v26 = vpop.permute.xlu1 %227  ;;  %v4818_v27 = vpop.permute.xlu0 %225  ;;  %v4908_v11 = vrot.slane %v493_v17, %v4866_v63 }
  0xd5   : > { %v405_v50 = vcombine.low %v349_v25, %v365_v59  ;;  %v421_v51 = vcombine.low %v356_v1, %v4878_v22  ;;  %v406_v7 = vcombine.high %v349_v25, %v365_v59 }
  0xd7   : > { %v413_v9 = vrot.slane %v405_v50, %v4893_v16  ;;  %v4922_v17 = vrot.slane %v421_v51, %v4893_v16  ;;  %v420_v15 = vrot.slane %v406_v7, %v4893_v16 }
  0xd8   : > { %v4820_v28 = vpop.permute.xlu1 %231  ;;  %v4822_v29 = vpop.permute.xlu0 %229 }
  0xd9   : > { %5524 = vst [vmem:[#allocation17_spill] sm:$0xff] %v4820_v28 }
  0xdc   : > { %v4824_v30 = vpop.permute.xlu1 %235  ;;  %v4826_v31 = vpop.permute.xlu0 %233 }
  0xdd   : > { %5525 = vst [vmem:[#allocation18_spill] sm:$0xff] %v4824_v30  ;;  %5526 = vst [vmem:[#allocation19_spill] sm:$0xff] %v4826_v31 }
  0xe0   : > { %v4828_v32 = vpop.permute.xlu1 %247  ;;  %v246_v33 = vpop.permute.xlu0 %245 }
  0xe4   : > { %v4830_v34 = vpop.permute.xlu1 %251  ;;  %v4832_v35 = vpop.permute.xlu0 %249 }
  0xe8   : > { %v4834_v36 = vpop.permute.xlu1 %255  ;;  %v4836_v37 = vpop.permute.xlu0 %253 }
  0xec   : > { %v4838_v38 = vpop.permute.xlu1 %259  ;;  %v4840_v39 = vpop.permute.xlu0 %257 }
  0xf0   : > { %v4842_v40 = vpop.permute.xlu1 %271  ;;  %v270_v41 = vpop.permute.xlu0 %269 }
  0xf4   : > { %v4844_v42 = vpop.permute.xlu1 %275  ;;  %v4846_v43 = vpop.permute.xlu0 %273 }
  0xf8   : > { %v4848_v44 = vpop.permute.xlu1 %279  ;;  %v4850_v45 = vpop.permute.xlu0 %277 }
  0xfc   : > { %v4852_v46 = vpop.permute.xlu1 %283  ;;  %v4854_v47 = vpop.permute.xlu0 %281 }
 0x100   : > { %v4856_v48 = vpop.permute.xlu1 %295  ;;  %v294_v49 = vpop.permute.xlu0 %293 }
 0x101   : > { %v373_v55 = vcombine.low %v246_v33, %v294_v49  ;;  %v374_v12 = vcombine.high %v246_v33, %v294_v49  ;;  %v509_v20 = vcombine.low %v4828_v32, %v4856_v48 }
 0x104   : > { %v4858_v53 = vpop.permute.xlu1 %299  ;;  %v4860_v54 = vpop.permute.xlu0 %297 }
 0x108   : > { %v304_v57 = vpop.permute.xlu1 %303  ;;  %v4862_v58 = vpop.permute.xlu0 %301 }
 0x109   : > { %v1053_v24 = vcombine.low %v4834_v36, %v304_v57  ;;  %v1054_v56 = vcombine.high %v4834_v36, %v304_v57  ;;  %v4925_v36 = vrot.slane %v509_v20, %v4866_v63 }
 0x10b   : > { %v4933_v31 = vrot.slane %v1054_v56, %v4866_v63 }
 0x10c   : > { %v4869_v14 = vpop.permute.xlu1 %307  ;;  %v4871_v30 = vpop.permute.xlu0 %305 }
 0x10d   : > { %v1325_v20 = vcombine.low %v4838_v38, %v4869_v14 }
 0x110   : > { %v4883_v28 = vpop.permute.xlu1 %319  ;;  %v318_v4 = vpop.permute.xlu0 %317 }
 0x111   : > { %v389_v60 = vcombine.low %v270_v41, %v318_v4  ;;  %v390_v61 = vcombine.high %v270_v41, %v318_v4  ;;  %v381_v4 = vrot.slane %v373_v55, %v4866_v63  ;;  %v388_v41 = vrot.slane %v374_v12, %v4866_v63 }
 0x112   : > { %v422_v12 = vcombine.high %v356_v1, %v4878_v22  ;;  %v525_v59 = vcombine.low %v4842_v40, %v4883_v28  ;;  %v4930_v1 = vrot.slane %v1053_v24, %v4866_v63  ;;  %v526_v56 = vcombine.high %v4842_v40, %v4883_v28 }
 0x113   : > { %v397_v33 = vrot.slane %v389_v60, %v4866_v63  ;;  %v404_v49 = vrot.slane %v390_v61, %v4866_v63  ;;  %v4913_v60 = vrot.slane %v494_v3, %v4866_v63 }
 0x114   : > { %v4902_v52 = vpop.permute.xlu1 %323  ;;  %v4918_v25 = vpop.permute.xlu0 %321  ;;  %v533_v7 = vrot.slane %v525_v59, %v4866_v63  ;;  %v629_v59 = vcombine.low %v4784_v8, %v4818_v27 }
 0x115   : > { %v437_v61 = vcombine.low %v381_v4, %v397_v33  ;;  %v453_v55 = vcombine.low %v388_v41, %v404_v49  ;;  %v438_v23 = vcombine.high %v381_v4, %v397_v33  ;;  %v454_v22 = vcombine.high %v388_v41, %v404_v49 }
 0x117   : > { %v445_v3 = vrot.slane %v437_v61, %v4893_v16  ;;  %v4940_v61 = vrot.slane %v453_v55, %v4893_v16  ;;  %v452_v24 = vrot.slane %v438_v23, %v4893_v16 }
 0x118   : > { %v328_v57 = vpop.permute.xlu1 %327 }
 0x119   : > { %v1069_v50 = vcombine.low %v4848_v44, %v328_v57  ;;  %v1070_v51 = vcombine.high %v4848_v44, %v328_v57  ;;  %v470_v33 = vcombine.high %v413_v9, %v445_v3  ;;  %v469_v4 = vcombine.low %v413_v9, %v445_v3 }
 0x11a   : > { %v1326_v44 = vcombine.high %v4838_v38, %v4869_v14  ;;  %v4955_v9 = vrot.slane %v454_v22, %v4893_v16  ;;  %v4965_v38 = vpop.permute.xlu0 %325  ;;  %v474_v3 = vcombine.high %v4922_v17, %v4940_v61  ;;  %v4972_v22 = vrot.slane %v422_v12, %v4893_v16 }
 0x11b   : > { %v4944_v49 = vrot.slane %v1069_v50, %v4866_v63  ;;  %v4947_v41 = vrot.slane %v1070_v51, %v4866_v63  ;;  %1461 = vxpose.xlu1.b32.start.end [1/1] (short) (narrow) %v470_v33, 8  ;;  %1429 = vxpose.xlu0.b32.start.end [1/1] (short) (narrow) %v469_v4, 8  ;;  %v510_v50 = vcombine.high %v4828_v32, %v4856_v48 }
 0x11c   : > { %v332_v55 = vpop.permute.xlu1 %331  ;;  %v471_v51 = vcombine.low %v420_v15, %v452_v24  ;;  %v541_v33 = vcombine.low %v4889_v62, %v4908_v11  ;;  %v573_v4 = vcombine.low %v4925_v36, %v533_v7  ;;  %v4980_v14 = vrot.slane %v1325_v20, %v4866_v63 }
 0x11d   : > { %v1341_v28 = vcombine.low %v4852_v46, %v332_v55  ;;  %v1342_v40 = vcombine.high %v4852_v46, %v332_v55  ;;  %v4983_v46 = vrot.slane %v1326_v44, %v4866_v63  ;;  %v540_v32 = vrot.slane %v526_v56, %v4866_v63 }
 0x11e   : > { %v476_v48 = vcombine.high %v4972_v22, %v4955_v9  ;;  %v4995_v23 = vrot.slane %v573_v4, %v4893_v16  ;;  %v574_v20 = vcombine.high %v4925_v36, %v533_v7  ;;  %v330_v4 = vpop.permute.xlu0 %329  ;;  %v472_v57 = vcombine.high %v420_v15, %v452_v24 }
 0x11f   : > { %5527 = vst [vmem:[#allocation20_spill] sm:$0xff] %v4983_v46  ;;  %v4986_v55 = vrot.slane %v1341_v28, %v4866_v63  ;;  %v4989_v12 = vrot.slane %v1342_v40, %v4866_v63  ;;  %1589 = vxpose.xlu1.b32.start.end [1/1] (short) (narrow) %v474_v3, 8  ;;  %1493 = vxpose.xlu0.b32.start.end [1/1] (short) (narrow) %v471_v51, 8 }
 0x120   : > { %v524_v3 = vrot.slane %v510_v50, %v4866_v63  ;;  %v934_v51 = vcombine.high %v4850_v45, %v4965_v38  ;;  %v549_v36 = vrot.slane %v541_v33, %v4893_v16  ;;  %v542_v7 = vcombine.high %v4889_v62, %v4908_v11 }
 0x121   : > { %5528 = vst [vmem:[#allocation21_spill] sm:$0xff] %v4986_v55  ;;  %5529 = vst [vmem:[#allocation22_spill] sm:$0xff] %v4989_v12  ;;  %v918_v28 = vcombine.high %v4836_v37, %v4862_v58  ;;  %v661_v40 = vcombine.low %v4846_v43, %v4918_v25  ;;  %v557_v50 = vcombine.low %v4905_v6, %v4913_v60 }
 0x122   : > { %v589_v56 = vcombine.low %v524_v3, %v540_v32  ;;  %v1205_v44 = vcombine.low %v4854_v47, %v330_v4  ;;  %v1206_v15 = vcombine.high %v4854_v47, %v330_v4  ;;  %v606_v24 = vcombine.high %v549_v36, %v4995_v23 }
 0x123   : > { %1653 = vxpose.xlu1.b32.start.end [1/1] (short) (narrow) %v476_v48, 8  ;;  %1525 = vxpose.xlu0.b32.start.end [1/1] (short) (narrow) %v472_v57, 8  ;;  %v588_v33 = vrot.slane %v574_v20, %v4893_v16  ;;  %v613_v62 = vcombine.low %v4712_v0, %v4804_v19  ;;  %v645_v11 = vcombine.low %v4832_v35, %v4860_v54 }
 0x124   : > { %v5027_v57 = vrot.slane %v934_v51, %v4866_v63  ;;  %v473_v48 = vcombine.low %v4922_v17, %v4940_v61  ;;  %v1189_v47 = vcombine.low %v4840_v39, %v4871_v30  ;;  %v1190_v20 = vcombine.high %v4840_v39, %v4871_v30 }
 0x125   : > { %v556_v4 = vrot.slane %v542_v7, %v4893_v16  ;;  %v5039_v12 = vrot.slane %v918_v28, %v4866_v63  ;;  %v669_v51 = vrot.slane %v661_v40, %v4866_v63  ;;  %v565_v17 = vrot.slane %v557_v50, %v4893_v16 }
 0x126   : > { %v597_v61 = vrot.slane %v589_v56, %v4893_v16  ;;  %v5045_v46 = vrot.slane %v1205_v44, %v4866_v63  ;;  %v5048_v55 = vrot.slane %v1206_v15, %v4866_v63  ;;  %v590_v39 = vcombine.high %v524_v3, %v540_v32 }
 0x127   : > { %1717 = vxpose.xlu1.b32.start.end [1/1] (short) (narrow) %v606_v24, 8  ;;  %1557 = vxpose.xlu0.b32.start.end [1/1] (short) (narrow) %v473_v48, 8  ;;  %v608_v30 = vcombine.high %v556_v4, %v588_v33  ;;  %v653_v7 = vrot.slane %v645_v11, %v4866_v63  ;;  %v475_v28 = vcombine.low %v4972_v22, %v4955_v9 }
 0x128   : > { %v997_v40 = vcombine.low %v5039_v12, %v5027_v57  ;;  %v998_v50 = vcombine.high %v5039_v12, %v5027_v57  ;;  %v637_v56 = vrot.slane %v629_v59, %v4866_v63  ;;  %v5059_v44 = vrot.slane %v1189_v47, %v4866_v63 }
 0x129   : > { %v5062_v15 = vrot.slane %v1190_v20, %v4866_v63  ;;  %v558_v32 = vcombine.high %v4905_v6, %v4913_v60  ;;  %v621_v9 = vrot.slane %v613_v62, %v4866_v63  ;;  %v662_v22 = vcombine.high %v4846_v43, %v4918_v25 }
 0x12a   : > { %v610_v3 = vcombine.high %v565_v17, %v597_v61  ;;  %v709_v24 = vcombine.low %v653_v7, %v669_v51  ;;  %v604_v59 = vrot.slane %v590_v39, %v4893_v16  ;;  %v1253_v11 = vcombine.low %v5059_v44, %v5045_v46 }
 0x12b   : > { %1781 = vxpose.xlu1.b32.start.end [1/1] (short) (narrow) %v608_v30, 8  ;;  %1621 = vxpose.xlu0.b32.start.end [1/1] (short) (narrow) %v475_v28, 8  ;;  %v1254_v48 = vcombine.high %v5059_v44, %v5045_v46  ;;  %v1269_v47 = vcombine.low %v5062_v15, %v5048_v55  ;;  %v605_v6 = vcombine.low %v549_v36, %v4995_v23 }
 0x12c   : > { %v630_v60 = vcombine.high %v4784_v8, %v4818_v27  ;;  %v646_v43 = vcombine.high %v4832_v35, %v4860_v54  ;;  %v572_v25 = vrot.slane %v558_v32, %v4893_v16  ;;  %v677_v62 = vcombine.low %v621_v9, %v637_v56 }
 0x12d   : > { %v614_v20 = vcombine.high %v4712_v0, %v4804_v19  ;;  %v1270_v30 = vcombine.high %v5062_v15, %v5048_v55  ;;  %v676_v39 = vrot.slane %v662_v22, %v4866_v63  ;;  %v717_v36 = vrot.slane %v709_v24, %v4893_v16 }
 0x12e   : > { %v612_v23 = vcombine.high %v572_v25, %v604_v59  ;;  %v710_v8 = vcombine.high %v653_v7, %v669_v51  ;;  %v607_v27 = vcombine.low %v556_v4, %v588_v33  ;;  %v644_v35 = vrot.slane %v630_v60, %v4866_v63 }
 0x12f   : > { %1845 = vxpose.xlu1.b32.start.end [1/1] (short) (narrow) %v610_v3, 8  ;;  %1685 = vxpose.xlu0.b32.start.end [1/1] (short) (narrow) %v605_v6, 8  ;;  %v660_v54 = vrot.slane %v646_v43, %v4866_v63  ;;  %v685_v28 = vrot.slane %v677_v62, %v4893_v16  ;;  %v678_v32 = vcombine.high %v621_v9, %v637_v56 }
 0x130   : > { %v628_v0 = vrot.slane %v614_v20, %v4866_v63  ;;  %v797_v19 = vcombine.low %v4844_v42, %v4902_v52  ;;  %v724_v3 = vrot.slane %v710_v8, %v4893_v16  ;;  %v749_v33 = vcombine.low %v4718_v2, %v4802_v18 }
 0x131   : > { %v742_v22 = vcombine.high %v685_v28, %v717_v36  ;;  %v725_v24 = vcombine.low %v660_v54, %v676_v39  ;;  %v609_v4 = vcombine.low %v565_v17, %v597_v61  ;;  %v765_v51 = vcombine.low %v4788_v10, %v4816_v26 }
 0x132   : > { %v781_v7 = vcombine.low %v4830_v34, %v4858_v53  ;;  %v692_v56 = vrot.slane %v678_v32, %v4893_v16  ;;  %v693_v9 = vcombine.low %v628_v0, %v644_v35  ;;  %v805_v6 = vrot.slane %v797_v19, %v4866_v63 }
 0x133   : > { %1909 = vxpose.xlu1.b32.start.end [1/1] (short) (narrow) %v612_v23, 8  ;;  %1749 = vxpose.xlu0.b32.start.end [1/1] (short) (narrow) %v607_v27, 8  ;;  %v733_v43 = vrot.slane %v725_v24, %v4893_v16  ;;  %v726_v62 = vcombine.high %v660_v54, %v676_v39  ;;  %v757_v20 = vrot.slane %v749_v33, %v4866_v63 }
 0x134   : > { %v744_v60 = vcombine.high %v692_v56, %v724_v3  ;;  %v611_v17 = vcombine.low %v572_v25, %v604_v59  ;;  %v773_v61 = vrot.slane %v765_v51, %v4866_v63  ;;  %v789_v23 = vrot.slane %v781_v7, %v4866_v63 }
 0x135   : > { %v701_v8 = vrot.slane %v693_v9, %v4893_v16  ;;  %v694_v27 = vcombine.high %v628_v0, %v644_v35  ;;  %v933_v32 = vcombine.low %v4850_v45, %v4965_v38  ;;  %v741_v39 = vcombine.low %v685_v28, %v717_v36 }
 0x136   : > { %v845_v24 = vcombine.low %v789_v23, %v805_v6  ;;  %v901_v59 = vcombine.low %v4794_v13, %v4822_v29  ;;  %v917_v25 = vcombine.low %v4836_v37, %v4862_v58  ;;  %v813_v33 = vcombine.low %v757_v20, %v773_v61 }
 0x137   : > { %1973 = vxpose.xlu1.b32.start.end [1/1] (short) (narrow) %v742_v22, 8  ;;  %1813 = vxpose.xlu0.b32.start.end [1/1] (short) (narrow) %v609_v4, 8  ;;  %v746_v19 = vcombine.high %v701_v8, %v733_v43  ;;  %v740_v22 = vrot.slane %v726_v62, %v4893_v16  ;;  %v708_v54 = vrot.slane %v694_v27, %v4893_v16 }
 0x138   : > { %v885_v35 = vcombine.low %v4726_v5, %v4808_v21  ;;  %v941_v45 = vrot.slane %v933_v32, %v4866_v63  ;;  %v853_v0 = vrot.slane %v845_v24, %v4893_v16  ;;  %v846_v36 = vcombine.high %v789_v23, %v805_v6 }
 0x139   : > { %v748_v38 = vcombine.high %v708_v54, %v740_v22  ;;  %v743_v28 = vcombine.low %v692_v56, %v724_v3  ;;  %v909_v4 = vrot.slane %v901_v59, %v4866_v63  ;;  %v925_v51 = vrot.slane %v917_v25, %v4866_v63  ;;  %v5530_v59 = vld [vmem:[#allocation19_spill] sm:$0xff] }
 0x13a   : > { %v821_v37 = vrot.slane %v813_v33, %v4893_v16  ;;  %v814_v58 = vcombine.high %v757_v20, %v773_v61  ;;  %v893_v7 = vrot.slane %v885_v35, %v4866_v63  ;;  %v902_v6 = vcombine.high %v4794_v13, %v4822_v29  ;;  %v5533_v33 = vld [vmem:[#allocation10_spill] sm:$0xff] }
 0x13b   : > { %2037 = vxpose.xlu1.b32.start.end [1/1] (short) (narrow) %v744_v60, 8  ;;  %1877 = vxpose.xlu0.b32.start.end [1/1] (short) (narrow) %v611_v17, 8  ;;  %v860_v60 = vrot.slane %v846_v36, %v4893_v16  ;;  %v981_v62 = vcombine.low %v925_v51, %v941_v45  ;;  %v745_v17 = vcombine.low %v701_v8, %v733_v43 }
 0x13c   : > { %v878_v9 = vcombine.high %v821_v37, %v853_v0  ;;  %v828_v3 = vrot.slane %v814_v58, %v4893_v16  ;;  %v949_v56 = vcombine.low %v893_v7, %v909_v4  ;;  %v886_v23 = vcombine.high %v4726_v5, %v4808_v21  ;;  %v5531_v5 = vld [vmem:[#allocation13_spill] sm:$0xff] }
 0x13d   : > { %v989_v61 = vrot.slane %v981_v62, %v4893_v16  ;;  %v982_v27 = vcombine.high %v925_v51, %v941_v45  ;;  %v747_v32 = vcombine.low %v708_v54, %v740_v22  ;;  %v950_v8 = vcombine.high %v893_v7, %v909_v4  ;;  %v5532_v54 = vld [vmem:[#allocation16_spill] sm:$0xff] }
 0x13e   : > { %v880_v20 = vcombine.high %v828_v3, %v860_v60  ;;  %v957_v43 = vrot.slane %v949_v56, %v4893_v16  ;;  %v900_v13 = vrot.slane %v886_v23, %v4866_v63  ;;  %v1173_v21 = vcombine.low %v5531_v5, %v5530_v59 }
 0x13f   : > { %2101 = vxpose.xlu1.b32.start.end [1/1] (short) (narrow) %v746_v19, 8  ;;  %1941 = vxpose.xlu0.b32.start.end [1/1] (short) (narrow) %v741_v39, 8  ;;  %v916_v19 = vrot.slane %v902_v6, %v4866_v63  ;;  %v996_v24 = vrot.slane %v982_v27, %v4893_v16  ;;  %v877_v39 = vcombine.low %v821_v37, %v853_v0 }
 0x140   : > { %v1014_v29 = vcombine.high %v957_v43, %v989_v61  ;;  %v964_v25 = vrot.slane %v950_v8, %v4893_v16  ;;  %v1157_v35 = vcombine.low %v5533_v33, %v5532_v54  ;;  %v879_v36 = vcombine.low %v828_v3, %v860_v60 }
 0x141   : > { %v965_v22 = vcombine.low %v900_v13, %v916_v19  ;;  %v1181_v0 = vrot.slane %v1173_v21, %v4866_v63  ;;  %v966_v4 = vcombine.high %v900_v13, %v916_v19  ;;  %v1012_v58 = vrot.slane %v998_v50, %v4893_v16  ;;  %v5537_v21 = vld [vmem:[#allocation11_spill] sm:$0xff] }
 0x142   : > { %v1016_v45 = vcombine.high %v964_v25, %v996_v24  ;;  %v1165_v51 = vrot.slane %v1157_v35, %v4866_v63  ;;  %v1013_v7 = vcombine.low %v957_v43, %v989_v61  ;;  %v1158_v62 = vcombine.high %v5533_v33, %v5532_v54 }
 0x143   : > { %2165 = vxpose.xlu1.b32.start.end [1/1] (short) (narrow) %v748_v38, 8  ;;  %2005 = vxpose.xlu0.b32.start.end [1/1] (short) (narrow) %v743_v28, 8  ;;  %v1005_v38 = vrot.slane %v997_v40, %v4893_v16  ;;  %v973_v28 = vrot.slane %v965_v22, %v4893_v16  ;;  %v1174_v40 = vcombine.high %v5531_v5, %v5530_v59  ;;  %v5536_v5 = vld [vmem:[#allocation17_spill] sm:$0xff] }
 0x144   : > { %v1221_v60 = vcombine.low %v1165_v51, %v1181_v0  ;;  %v1261_v6 = vrot.slane %v1253_v11, %v4893_v16  ;;  %v1015_v12 = vcombine.low %v964_v25, %v996_v24  ;;  %v1222_v3 = vcombine.high %v1165_v51, %v1181_v0  ;;  %v5535_v24 = vld [vmem:[#allocation8_spill] sm:$0xff] }
 0x145   : > { %v1018_v37 = vcombine.high %v973_v28, %v1005_v38  ;;  %v1188_v57 = vrot.slane %v1174_v40, %v4866_v63  ;;  %v1172_v56 = vrot.slane %v1158_v62, %v4866_v63  ;;  %v798_v23 = vcombine.high %v4844_v42, %v4902_v52 }
 0x146   : > { %v1229_v50 = vrot.slane %v1221_v60, %v4893_v16  ;;  %v1268_v61 = vrot.slane %v1254_v48, %v4893_v16  ;;  %v750_v11 = vcombine.high %v4718_v2, %v4802_v18  ;;  %v1017_v27 = vcombine.low %v973_v28, %v1005_v38 }
 0x147   : > { %2229 = vxpose.xlu1.b32.start.end [1/1] (short) (narrow) %v878_v9, 8  ;;  %2069 = vxpose.xlu0.b32.start.end [1/1] (short) (narrow) %v745_v17, 8  ;;  %v980_v9 = vrot.slane %v966_v4, %v4893_v16  ;;  %v782_v19 = vcombine.high %v4830_v34, %v4858_v53  ;;  %v1236_v43 = vrot.slane %v1222_v3, %v4893_v16 }
 0x148   : > { %v1237_v42 = vcombine.low %v1172_v56, %v1188_v57  ;;  %v812_v52 = vrot.slane %v798_v23, %v4866_v63  ;;  %v1277_v2 = vrot.slane %v1269_v47, %v4893_v16  ;;  %v764_v18 = vrot.slane %v750_v11, %v4866_v63  ;;  %v5540_v23 = vld [vmem:[#allocation15_spill] sm:$0xff] }
 0x149   : > { %v1020_v17 = vcombine.high %v980_v9, %v1012_v58  ;;  %v1288_v8 = vcombine.high %v1236_v43, %v1268_v61  ;;  %v1019_v46 = vcombine.low %v980_v9, %v1012_v58  ;;  %v1238_v53 = vcombine.high %v1172_v56, %v1188_v57 }
 0x14a   : > { %v1245_v34 = vrot.slane %v1237_v42, %v4893_v16  ;;  %v1284_v13 = vrot.slane %v1270_v30, %v4893_v16  ;;  %v1285_v47 = vcombine.low %v1229_v50, %v1261_v6  ;;  %v1037_v25 = vcombine.low %v5537_v21, %v5536_v5 }
 0x14b   : > { %2293 = vxpose.xlu1.b32.start.end [1/1] (short) (narrow) %v880_v20, 8  ;;  %2133 = vxpose.xlu0.b32.start.end [1/1] (short) (narrow) %v747_v32, 8  ;;  %v1286_v20 = vcombine.high %v1229_v50, %v1261_v6  ;;  %v766_v32 = vcombine.high %v4788_v10, %v4816_v26  ;;  %v796_v26 = vrot.slane %v782_v19, %v4866_v63 }
 0x14c   : > { %v1290_v48 = vcombine.high %v1245_v34, %v1277_v2  ;;  %v1252_v22 = vrot.slane %v1238_v53, %v4893_v16  ;;  %v1045_v30 = vrot.slane %v1037_v25, %v4866_v63  ;;  %v1289_v28 = vcombine.low %v1245_v34, %v1277_v2 }
 0x14d   : > { %v780_v10 = vrot.slane %v766_v32, %v4866_v63  ;;  %v861_v44 = vcombine.low %v796_v26, %v812_v52  ;;  %v862_v54 = vcombine.high %v796_v26, %v812_v52  ;;  %v1038_v51 = vcombine.high %v5537_v21, %v5536_v5  ;;  %v5543_v32 = vld [vmem:[#allocation12_spill] sm:$0xff] }
 0x14e   : > { %v1292_v33 = vcombine.high %v1252_v22, %v1284_v13  ;;  %v5538_v40 = vcombine.low %v4930_v1, %v4944_v49  ;;  %v1291_v60 = vcombine.low %v1252_v22, %v1284_v13  ;;  %v5539_v50 = vcombine.high %v4930_v1, %v4944_v49 }
 0x14f   : > { %2485 = vxpose.xlu1.b32.start.end [1/1] (short) (narrow) %v1014_v29, 8  ;;  %2197 = vxpose.xlu0.b32.start.end [1/1] (short) (narrow) %v877_v39, 8  ;;  %v5534_v29 = vld [vmem:[#allocation14_spill] sm:$0xff]  ;;  %v829_v59 = vcombine.low %v764_v18, %v780_v10  ;;  %v869_v35 = vrot.slane %v861_v44, %v4893_v16  ;;  %v830_v15 = vcombine.high %v764_v18, %v780_v10 }
 0x150   : > { %v1021_v39 = vcombine.low %v5535_v24, %v5534_v29  ;;  %v876_v0 = vrot.slane %v862_v54, %v4893_v16  ;;  %v1022_v4 = vcombine.high %v5535_v24, %v5534_v29  ;;  %v1125_v9 = vrot.slane %v5538_v40, %v4893_v16  ;;  %v5546_v24 = vld [vmem:[#allocation21_spill] sm:$0xff] }
 0x151   : > { %v837_v38 = vrot.slane %v829_v59, %v4893_v16  ;;  %v844_v58 = vrot.slane %v830_v15, %v4893_v16  ;;  %v1132_v3 = vrot.slane %v5539_v50, %v4893_v16  ;;  %v5544_v52 = vcombine.low %v4933_v31, %v4947_v41 }
 0x152   : > { %v1029_v55 = vrot.slane %v1021_v39, %v4866_v63  ;;  %v1036_v62 = vrot.slane %v1022_v4, %v4866_v63  ;;  %v5545_v26 = vcombine.high %v4933_v31, %v4947_v41  ;;  %v5547_v39 = vcombine.low %v4980_v14, %v5546_v24 }
 0x153   : > { %2549 = vxpose.xlu1.b32.start.end [1/1] (short) (narrow) %v1016_v45, 8  ;;  %2261 = vxpose.xlu0.b32.start.end [1/1] (short) (narrow) %v879_v36, 8  ;;  %v1287_v45 = vcombine.low %v1236_v43, %v1268_v61  ;;  %v882_v36 = vcombine.high %v837_v38, %v869_v35  ;;  %v881_v56 = vcombine.low %v837_v38, %v869_v35  ;;  %v5550_v38 = vld [vmem:[#allocation22_spill] sm:$0xff] }
 0x154   : > { %v1086_v6 = vcombine.high %v1029_v55, %v1045_v30  ;;  %v883_v1 = vcombine.low %v844_v58, %v876_v0  ;;  %v1148_v34 = vrot.slane %v5545_v26, %v4893_v16  ;;  %v1397_v59 = vrot.slane %v5547_v39, %v4893_v16 }
 0x155   : > { %v5548_v54 = vcombine.high %v4980_v14, %v5546_v24 }
 0x156   : > { %v1100_v43 = vrot.slane %v1086_v6, %v4893_v16 }
 0x157   : > { %2613 = vxpose.xlu1.b32.start.end [1/1] (short) (narrow) %v1018_v37, 8  ;;  %2453 = vxpose.xlu0.b32.start.end [1/1] (short) (narrow) %v1013_v7, 8  ;;  %v1085_v37 = vcombine.low %v1029_v55, %v1045_v30  ;;  %v884_v7 = vcombine.high %v844_v58, %v876_v0  ;;  %v5549_v30 = vld [vmem:[#allocation20_spill] sm:$0xff] }
 0x158   : > { %v1152_v42 = vcombine.high %v1100_v43, %v1132_v3  ;;  %v1151_v31 = vcombine.low %v1100_v43, %v1132_v3 }
 0x15b   : > { %2677 = vxpose.xlu1.b32.start.end [1/1] (short) (narrow) %v1020_v17, 8  ;;  %2517 = vxpose.xlu0.b32.start.end [1/1] (short) (narrow) %v1015_v12, 8  ;;  %v1052_v17 = vrot.slane %v1038_v51, %v4866_v63  ;;  %v1093_v12 = vrot.slane %v1085_v37, %v4893_v16  ;;  %v5552_v37 = vcombine.high %v5549_v30, %v5550_v38 }
 0x15d   : > { %v1150_v57 = vcombine.high %v1093_v12, %v1125_v9  ;;  %v1101_v11 = vcombine.low %v1036_v62, %v1052_v17  ;;  %v1102_v2 = vcombine.high %v1036_v62, %v1052_v17  ;;  %v1149_v53 = vcombine.low %v1093_v12, %v1125_v9 }
 0x15e   : > { %v1420_v58 = vrot.slane %v5552_v37, %v4893_v16 }
 0x15f   : > { %2997 = vxpose.xlu1.b32.start.end [1/1] (short) (narrow) %v1286_v20, 8  ;;  %2581 = vxpose.xlu0.b32.start.end [1/1] (short) (narrow) %v1017_v27, 8  ;;  %v5541_v20 = vld [vmem:[#allocation9_spill] sm:$0xff]  ;;  %v5542_v27 = vld [vmem:[#allocation18_spill] sm:$0xff] }
 0x160   : > { %v1293_v61 = vcombine.low %v5541_v20, %v5540_v23  ;;  %v1309_v19 = vcombine.low %v5543_v32, %v5542_v27  ;;  %v1294_v44 = vcombine.high %v5541_v20, %v5540_v23 }
 0x162   : > { %v1301_v49 = vrot.slane %v1293_v61, %v4866_v63  ;;  %v1317_v18 = vrot.slane %v1309_v19, %v4866_v63  ;;  %v1308_v41 = vrot.slane %v1294_v44, %v4866_v63 }
 0x163   : > { %3061 = vxpose.xlu1.b32.start.end [1/1] (short) (narrow) %v1288_v8, 8  ;;  %2645 = vxpose.xlu0.b32.start.end [1/1] (short) (narrow) %v1019_v46, 8  ;;  %v1141_v8 = vrot.slane %v5544_v52, %v4893_v16  ;;  %v1109_v46 = vrot.slane %v1101_v11, %v4893_v16 }
 0x164   : > { %v1357_v13 = vcombine.low %v1301_v49, %v1317_v18  ;;  %v1358_v21 = vcombine.high %v1301_v49, %v1317_v18 }
 0x165   : > { %v1154_v10 = vcombine.high %v1109_v46, %v1141_v8  ;;  %v1153_v35 = vcombine.low %v1109_v46, %v1141_v8 }
 0x166   : > { %v1365_v25 = vrot.slane %v1357_v13, %v4893_v16  ;;  %v1372_v55 = vrot.slane %v1358_v21, %v4893_v16 }
 0x167   : > { %3125 = vxpose.xlu1.b32.start.end [1/1] (short) (narrow) %v1290_v48, 8  ;;  %2965 = vxpose.xlu0.b32.start.end [1/1] (short) (narrow) %v1285_v47, 8  ;;  %v1310_v48 = vcombine.high %v5543_v32, %v5542_v27  ;;  %v1116_v47 = vrot.slane %v1102_v2, %v4893_v16 }
 0x168   : > { %v1422_v22 = vcombine.high %v1365_v25, %v1397_v59 }
 0x169   : > { %v1156_v29 = vcombine.high %v1116_v47, %v1148_v34  ;;  %v1324_v5 = vrot.slane %v1310_v48, %v4866_v63 }
 0x16b   : > { %3189 = vxpose.xlu1.b32.start.end [1/1] (short) (narrow) %v1292_v33, 8  ;;  %3029 = vxpose.xlu0.b32.start.end [1/1] (short) (narrow) %v1287_v45, 8  ;;  %v1404_v33 = vrot.slane %v5548_v54, %v4893_v16  ;;  %v1373_v45 = vcombine.low %v1308_v41, %v1324_v5  ;;  %v1374_v4 = vcombine.high %v1308_v41, %v1324_v5 }
 0x16d   : > { %v1424_v15 = vcombine.high %v1372_v55, %v1404_v33  ;;  %v1381_v51 = vrot.slane %v1373_v45, %v4893_v16  ;;  %v1388_v40 = vrot.slane %v1374_v4, %v4893_v16 }
 0x16f   : > { %2357 = vxpose.xlu1.b32.start.end [1/1] (short) (narrow) %v882_v36, 8  ;;  %3093 = vxpose.xlu0.b32.start.end [1/1] (short) (narrow) %v1289_v28, 8  ;;  %v5551_v36 = vcombine.low %v5549_v30, %v5550_v38  ;;  %v1155_v28 = vcombine.low %v1116_v47, %v1148_v34  ;;  %v1428_v9 = vcombine.high %v1388_v40, %v1420_v58 }
 0x170   : > { %v1427_v17 = vcombine.low %v1388_v40, %v1420_v58 }
 0x171   : > { %v1413_v0 = vrot.slane %v5551_v36, %v4893_v16 }
 0x173   : > { %2421 = vxpose.xlu1.b32.start.end [1/1] (short) (narrow) %v884_v7, 8  ;;  %3157 = vxpose.xlu0.b32.start.end [1/1] (short) (narrow) %v1291_v60, 8  ;;  %v1426_v14 = vcombine.high %v1381_v51, %v1413_v0  ;;  %v1421_v7 = vcombine.low %v1365_v25, %v1397_v59  ;;  %v1423_v60 = vcombine.low %v1372_v55, %v1404_v33 }
 0x174   : > { %v1425_v62 = vcombine.low %v1381_v51, %v1413_v0 }
 0x177   : > { %2741 = vxpose.xlu1.b32.start.end [1/1] (short) (narrow) %v1150_v57, 8  ;;  %2325 = vxpose.xlu0.b32.start.end [1/1] (short) (narrow) %v881_v56, 8 }
 0x17b   : > { %2805 = vxpose.xlu1.b32.start.end [1/1] (short) (narrow) %v1152_v42, 8  ;;  %2389 = vxpose.xlu0.b32.start.end [1/1] (short) (narrow) %v883_v1, 8 }
 0x17f   : > { %2869 = vxpose.xlu1.b32.start.end [1/1] (short) (narrow) %v1154_v10, 8  ;;  %2709 = vxpose.xlu0.b32.start.end [1/1] (short) (narrow) %v1149_v53, 8 }
 0x183   : > { %2933 = vxpose.xlu1.b32.start.end [1/1] (short) (narrow) %v1156_v29, 8  ;;  %2773 = vxpose.xlu0.b32.start.end [1/1] (short) (narrow) %v1151_v31, 8 }
 0x187   : > { %3253 = vxpose.xlu1.b32.start.end [1/1] (short) (narrow) %v1422_v22, 8  ;;  %2837 = vxpose.xlu0.b32.start.end [1/1] (short) (narrow) %v1153_v35, 8 }
 0x18b   : > { %3317 = vxpose.xlu1.b32.start.end [1/1] (short) (narrow) %v1424_v15, 8  ;;  %2901 = vxpose.xlu0.b32.start.end [1/1] (short) (narrow) %v1155_v28, 8 }
 0x18f   : > { %3381 = vxpose.xlu1.b32.start.end [1/1] (short) (narrow) %v1426_v14, 8  ;;  %3221 = vxpose.xlu0.b32.start.end [1/1] (short) (narrow) %v1421_v7, 8 }
 0x193   : > { %3445 = vxpose.xlu1.b32.start.end [1/1] (short) (narrow) %v1428_v9, 8  ;;  %3285 = vxpose.xlu0.b32.start.end [1/1] (short) (narrow) %v1423_v60, 8 }
 0x197   : > { %3349 = vxpose.xlu0.b32.start.end [1/1] (short) (narrow) %v1425_v62, 8 }
 0x19b   : > { %v1477_v6 = vpop.trf.xlu1  ;;  %v1445_v12 = vpop.trf.xlu0  ;;  %3413 = vxpose.xlu0.b32.start.end [1/1] (short) (narrow) %v1427_v17, 8 }
 0x19f   : > { %v1605_v57 = vpop.trf.xlu1  ;;  %v1509_v50 = vpop.trf.xlu0 }
 0x1a0   : > { %v3527_v47 = vcombine.low %v1477_v6, %v1605_v57 }
 0x1a2   : > { %v3534_v25 = vrot.slane %v3527_v47, %v4866_v63 }
 0x1a3   : > { %v1669_v3 = vpop.trf.xlu1  ;;  %v1541_v56 = vpop.trf.xlu0 }
 0x1a4   : > { %v3535_v29 = vcombine.low %v1541_v56, %v1669_v3 }
 0x1a6   : > { %v3542_v22 = vrot.slane %v3535_v29, %v4866_v63 }
 0x1a7   : > { %v1733_v23 = vpop.trf.xlu1  ;;  %v1573_v20 = vpop.trf.xlu0 }
 0x1a8   : > { %v3477_v24 = vcombine.low %v1445_v12, %v1573_v20  ;;  %v3559_v0 = vcombine.low %v3534_v25, %v3542_v22 }
 0x1aa   : > { %v3484_v54 = vrot.slane %v3477_v24, %v4866_v63  ;;  %v3566_v9 = vrot.slane %v3559_v0, %v4893_v16 }
 0x1ab   : > { %v1797_v61 = vpop.trf.xlu1  ;;  %v1637_v11 = vpop.trf.xlu0 }
 0x1ac   : > { %v3485_v53 = vcombine.low %v1509_v50, %v1637_v11 }
 0x1ae   : > { %v3492_v31 = vrot.slane %v3485_v53, %v4866_v63 }
 0x1af   : > { %v1861_v27 = vpop.trf.xlu1  ;;  %v1701_v19 = vpop.trf.xlu0 }
 0x1b0   : > { %v3543_v32 = vcombine.low %v1733_v23, %v1861_v27  ;;  %v3509_v55 = vcombine.low %v3484_v54, %v3492_v31 }
 0x1b2   : > { %v3550_v8 = vrot.slane %v3543_v32, %v4866_v63  ;;  %v3516_v37 = vrot.slane %v3509_v55, %v4893_v16 }
 0x1b3   : > { %v1925_v43 = vpop.trf.xlu1  ;;  %v1765_v52 = vpop.trf.xlu0 }
 0x1b4   : > { %v3551_v42 = vcombine.low %v1797_v61, %v1925_v43  ;;  %v4341_v6 = vcombine.low %v3516_v37, %v3566_v9  ;;  %v4343_v12 = vcombine.high %v3516_v37, %v3566_v9 }
 0x1b6   : > { %v3558_v1 = vrot.slane %v3551_v42, %v4866_v63  ;;  %v3885_v61 = vrot.slane %v4341_v6, %v4866_v63  ;;  %v3901_v11 = vrot.slane %v4343_v12, %v4866_v63 }
 0x1b7   : > { %v1989_v49 = vpop.trf.xlu1  ;;  %v1829_v18 = vpop.trf.xlu0 }
 0x1b8   : > { %v3567_v2 = vcombine.low %v3550_v8, %v3558_v1  ;;  %v3493_v46 = vcombine.low %v1701_v19, %v1829_v18 }
 0x1ba   : > { %v3500_v44 = vrot.slane %v3493_v46, %v4866_v63  ;;  %v3574_v41 = vrot.slane %v3567_v2, %v4893_v16  ;;  %v3941_v2 = vcombine.low %v3885_v61, %v3901_v11 }
 0x1bb   : > { %v2053_v10 = vpop.trf.xlu1  ;;  %v1893_v26 = vpop.trf.xlu0 }
 0x1bc   : > { %v3501_v34 = vcombine.low %v1765_v52, %v1893_v26 }
 0x1be   : > { %v3508_v48 = vrot.slane %v3501_v34, %v4866_v63  ;;  %v5299_v34 = vrot.slane %v3941_v2, %v4893_v16 }
 0x1bf   : > { %v2117_v13 = vpop.trf.xlu1  ;;  %v1957_v39 = vpop.trf.xlu0 }
 0x1c0   : > { %v3517_v59 = vcombine.low %v3500_v44, %v3508_v48  ;;  %v3627_v4 = vcombine.low %v1989_v49, %v2117_v13  ;;  %v3942_v44 = vcombine.high %v3885_v61, %v3901_v11 }
 0x1c2   : > { %v3524_v5 = vrot.slane %v3517_v59, %v4893_v16  ;;  %v3634_v62 = vrot.slane %v3627_v4, %v4866_v63 }
 0x1c3   : > { %v2181_v21 = vpop.trf.xlu1  ;;  %v2021_v33 = vpop.trf.xlu0 }
 0x1c4   : > { %v4342_v35 = vcombine.low %v3524_v5, %v3574_v41  ;;  %v4344_v45 = vcombine.high %v3524_v5, %v3574_v41  ;;  %v3635_v38 = vcombine.low %v2053_v10, %v2181_v21 }
 0x1c6   : > { %v5269_v15 = vrot.slane %v4342_v35, %v4866_v63  ;;  %v5272_v30 = vrot.slane %v4344_v45, %v4866_v63  ;;  %v3642_v58 = vrot.slane %v3635_v38, %v4866_v63 }
 0x1c7   : > { %v5274_v36 = vpop.trf.xlu1  ;;  %v2085_v28 = vpop.trf.xlu0 }
 0x1c8   : > { %v3957_v51 = vcombine.low %v5269_v15, %v5272_v30  ;;  %v3958_v14 = vcombine.high %v5269_v15, %v5272_v30  ;;  %v3577_v7 = vcombine.low %v1957_v39, %v2085_v28  ;;  %v3659_v57 = vcombine.low %v3634_v62, %v3642_v58 }
 0x1c9   : > { %v5313_v39 = vrot.slane %v3942_v44, %v4893_v16 }
 0x1ca   : > { %v3584_v50 = vrot.slane %v3577_v7, %v4866_v63  ;;  %v3666_v27 = vrot.slane %v3659_v57, %v4893_v16 }
 0x1cb   : > { %v5282_v40 = vpop.trf.xlu1  ;;  %v2149_v60 = vpop.trf.xlu0 }
 0x1cc   : > { %v3585_v17 = vcombine.low %v2021_v33, %v2149_v60 }
 0x1ce   : > { %v3592_v3 = vrot.slane %v3585_v17, %v4866_v63 }
 0x1cf   : > { %v2501_v56 = vpop.trf.xlu1  ;;  %v5288_v23 = vpop.trf.xlu0 }
 0x1d0   : > { %v3609_v20 = vcombine.low %v3584_v50, %v3592_v3 }
 0x1d2   : > { %v3616_v32 = vrot.slane %v3609_v20, %v4893_v16 }
 0x1d3   : > { %v2565_v19 = vpop.trf.xlu1  ;;  %v5294_v43 = vpop.trf.xlu0 }
 0x1d4   : > { %v4345_v42 = vcombine.low %v3616_v32, %v3666_v27  ;;  %v4347_v52 = vcombine.high %v3616_v32, %v3666_v27 }
 0x1d6   : > { %v3917_v8 = vrot.slane %v4345_v42, %v4866_v63  ;;  %v3933_v1 = vrot.slane %v4347_v52, %v4866_v63 }
 0x1d7   : > { %v2629_v49 = vpop.trf.xlu1  ;;  %v2469_v18 = vpop.trf.xlu0 }
 0x1d8   : > { %v3973_v46 = vcombine.low %v3917_v8, %v3933_v1  ;;  %v3974_v10 = vcombine.high %v3917_v8, %v3933_v1  ;;  %v3727_v35 = vcombine.low %v2501_v56, %v2629_v49 }
 0x1da   : > { %v5302_v53 = vrot.slane %v3973_v46, %v4893_v16  ;;  %v5307_v47 = vrot.slane %v3974_v10, %v4893_v16  ;;  %v3734_v4 = vrot.slane %v3727_v35, %v4866_v63 }
 0x1db   : > { %v2693_v26 = vpop.trf.xlu1  ;;  %v2533_v48 = vpop.trf.xlu0 }
 0x1dc   : > { %v4006_v13 = vcombine.high %v5299_v34, %v5302_v53  ;;  %v4005_v29 = vcombine.low %v5299_v34, %v5302_v53  ;;  %v4008_v31 = vcombine.high %v5313_v39, %v5307_v47  ;;  %v3735_v22 = vcombine.low %v2565_v19, %v2693_v26 }
 0x1de   : > { %4151 = vrot.lane.b32.xlu0 %v4006_v13, %s4573_s13  ;;  %v3742_v38 = vrot.slane %v3735_v22, %v4866_v63 }
 0x1df   : > { %v3013_v24 = vpop.trf.xlu1  ;;  %v2597_v59 = vpop.trf.xlu0 }
 0x1e0   : > { %v3677_v54 = vcombine.low %v2469_v18, %v2597_v59  ;;  %v3759_v9 = vcombine.low %v3734_v4, %v3742_v38 }
 0x1e2   : > { %4167 = vrot.lane.b32.xlu0 %v4008_v31, %s4574_s15  ;;  %v3684_v0 = vrot.slane %v3677_v54, %v4866_v63  ;;  %v3766_v50 = vrot.slane %v3759_v9, %v4893_v16 }
 0x1e3   : > { %v3077_v41 = vpop.trf.xlu1  ;;  %v2661_v5 = vpop.trf.xlu0 }
 0x1e4   : > { %v3685_v21 = vcombine.low %v2533_v48, %v2661_v5 }
 0x1e6   : > { %v3692_v45 = vrot.slane %v3685_v21, %v4866_v63 }
 0x1e7   : > { %v3141_v25 = vpop.trf.xlu1  ;;  %v2981_v33 = vpop.trf.xlu0 }
 0x1e8   : > { %v3709_v37 = vcombine.low %v3684_v0, %v3692_v45  ;;  %v3827_v62 = vcombine.low %v3013_v24, %v3141_v25 }
 0x1ea   : > { %v3716_v17 = vrot.slane %v3709_v37, %v4893_v16  ;;  %v3834_v56 = vrot.slane %v3827_v62, %v4866_v63 }
 0x1eb   : > { %v3205_v55 = vpop.trf.xlu1  ;;  %v3045_v28 = vpop.trf.xlu0 }
 0x1ec   : > { %v3835_v58 = vcombine.low %v3077_v41, %v3205_v55  ;;  %v4349_v61 = vcombine.low %v3716_v17, %v3766_v50  ;;  %v4351_v11 = vcombine.high %v3716_v17, %v3766_v50 }
 0x1ee   : > { %v3842_v6 = vrot.slane %v3835_v58, %v4866_v63  ;;  %v4021_v2 = vrot.slane %v4349_v61, %v4866_v63  ;;  %v4037_v18 = vrot.slane %v4351_v11, %v4866_v63  ;;  %v3965_v61 = vrot.slane %v3957_v51, %v4893_v16 }
 0x1ef   : > { %v2373_v7 = vpop.trf.xlu1  ;;  %v3109_v60 = vpop.trf.xlu0 }
 0x1f0   : > { %v3777_v12 = vcombine.low %v2981_v33, %v3109_v60  ;;  %v3859_v32 = vcombine.low %v3834_v56, %v3842_v6  ;;  %v3643_v8 = vcombine.low %v5274_v36, %v2373_v7  ;;  %v4077_v41 = vcombine.low %v4021_v2, %v4037_v18 }
 0x1f1   : > { %v4078_v6 = vcombine.high %v4021_v2, %v4037_v18 }
 0x1f2   : > { %v3784_v19 = vrot.slane %v3777_v12, %v4866_v63  ;;  %v3866_v10 = vrot.slane %v3859_v32, %v4893_v16  ;;  %v3650_v48 = vrot.slane %v3643_v8, %v4866_v63 }
 0x1f3   : > { %v2437_v57 = vpop.trf.xlu1  ;;  %v3173_v3 = vpop.trf.xlu0 }
 0x1f4   : > { %v3785_v20 = vcombine.low %v3045_v28, %v3173_v3  ;;  %v3651_v27 = vcombine.low %v5282_v40, %v2437_v57  ;;  %v4007_v57 = vcombine.low %v5313_v39, %v5307_v47 }
 0x1f6   : > { %v3792_v42 = vrot.slane %v3785_v20, %v4866_v63  ;;  %v3658_v46 = vrot.slane %v3651_v27, %v4866_v63  ;;  %v4092_v20 = vrot.slane %v4078_v6, %v4893_v16 }
 0x1f7   : > { %v5329_v52 = vpop.trf.xlu1  ;;  %v2341_v1 = vpop.trf.xlu0 }
 0x1f8   : > { %v3809_v49 = vcombine.low %v3784_v19, %v3792_v42  ;;  %v3593_v26 = vcombine.low %v5288_v23, %v2341_v1  ;;  %v3667_v31 = vcombine.low %v3650_v48, %v3658_v46 }
 0x1fa   : > { %v3816_v40 = vrot.slane %v3809_v49, %v4893_v16  ;;  %v3600_v25 = vrot.slane %v3593_v26, %v4866_v63  ;;  %v3674_v45 = vrot.slane %v3667_v31, %v4893_v16 }
 0x1fb   : > { %v5338_v44 = vpop.trf.xlu1  ;;  %v2405_v13 = vpop.trf.xlu0 }
 0x1fc   : > { %v4353_v36 = vcombine.low %v3816_v40, %v3866_v10  ;;  %v4355_v24 = vcombine.high %v3816_v40, %v3866_v10  ;;  %v3601_v59 = vcombine.low %v5294_v43, %v2405_v13  ;;  %v5349_v43 = vrot.slane %v4077_v41, %v4893_v16 }
 0x1fd   : > { %v3972_v40 = vrot.slane %v3958_v14, %v4893_v16 }
 0x1fe   : > { %v4053_v5 = vrot.slane %v4353_v36, %v4866_v63  ;;  %v4069_v21 = vrot.slane %v4355_v24, %v4866_v63  ;;  %v3608_v22 = vrot.slane %v3601_v59, %v4866_v63 }
 0x1ff   : > { %v2885_v23 = vpop.trf.xlu1  ;;  %v2725_v54 = vpop.trf.xlu0 }
 0x200   : > { %v3617_v33 = vcombine.low %v3600_v25, %v3608_v22  ;;  %v4109_v35 = vcombine.low %v4053_v5, %v4069_v21  ;;  %v4110_v7 = vcombine.high %v4053_v5, %v4069_v21  ;;  %v3743_v46 = vcombine.low %v5329_v52, %v2885_v23 }
 0x202   : > { %v3624_v55 = vrot.slane %v3617_v33, %v4893_v16  ;;  %v5352_v0 = vrot.slane %v4109_v35, %v4893_v16  ;;  %v4124_v50 = vrot.slane %v4110_v7, %v4893_v16  ;;  %v3750_v52 = vrot.slane %v3743_v46, %v4866_v63 }
 0x203   : > { %v2949_v38 = vpop.trf.xlu1  ;;  %v2789_v28 = vpop.trf.xlu0 }
 0x204   : > { %v4346_v4 = vcombine.low %v3624_v55, %v3674_v45  ;;  %v4348_v37 = vcombine.high %v3624_v55, %v3674_v45  ;;  %v4142_v58 = vcombine.high %v5349_v43, %v5352_v0  ;;  %v4141_v9 = vcombine.low %v5349_v43, %v5352_v0 }
 0x205   : > { %v4143_v32 = vcombine.low %v4092_v20, %v4124_v50  ;;  %v3751_v8 = vcombine.low %v5338_v44, %v2949_v38  ;;  %v4144_v2 = vcombine.high %v4092_v20, %v4124_v50 }
 0x206   : > { %v3924_v60 = vrot.slane %v4346_v4, %v4866_v63  ;;  %v3940_v62 = vrot.slane %v4348_v37, %v4866_v63  ;;  %4153 = vrot.lane.b32.xlu1 %v4142_v58, %s4573_s13 }
 0x207   : > { %v3269_v17 = vpop.trf.xlu1  ;;  %v2853_v12 = vpop.trf.xlu0  ;;  %v3758_v26 = vrot.slane %v3751_v8, %v4866_v63 }
 0x208   : > { %v3989_v3 = vcombine.low %v3924_v60, %v3940_v62  ;;  %v3990_v42 = vcombine.high %v3924_v60, %v3940_v62  ;;  %v3693_v1 = vcombine.low %v2725_v54, %v2853_v12 }
 0x209   : > { %v3767_v31 = vcombine.low %v3750_v52, %v3758_v26 }
 0x20a   : > { %4159 = vrot.lane.b32.xlu1 %v4007_v57, %s4575_s16  ;;  %v3997_v11 = vrot.slane %v3989_v3, %v4893_v16  ;;  %v4004_v51 = vrot.slane %v3990_v42, %v4893_v16  ;;  %v3700_v44 = vrot.slane %v3693_v1, %v4866_v63 }
 0x20b   : > { %v3333_v56 = vpop.trf.xlu1  ;;  %v2917_v27 = vpop.trf.xlu0  ;;  %v3774_v25 = vrot.slane %v3767_v31, %v4893_v16 }
 0x20c   : > { %v4009_v19 = vcombine.low %v3965_v61, %v3997_v11  ;;  %v3701_v47 = vcombine.low %v2789_v28, %v2917_v27  ;;  %v4010_v18 = vcombine.high %v3965_v61, %v3997_v11  ;;  %v4011_v36 = vcombine.low %v3972_v40, %v4004_v51 }
 0x20d   : > { %v4012_v21 = vcombine.high %v3972_v40, %v4004_v51 }
 0x20e   : > { %4161 = vrot.lane.b32.xlu1 %v4143_v32, %s4575_s16  ;;  %4175 = vrot.lane.b32.xlu0 %v4009_v19, %s4576_s17  ;;  %v3708_v10 = vrot.slane %v3701_v47, %v4866_v63 }
 0x20f   : > { %v3397_v39 = vpop.trf.xlu1  ;;  %v3237_v49 = vpop.trf.xlu0 }
 0x210   : > { %v3717_v24 = vcombine.low %v3700_v44, %v3708_v10  ;;  %v3843_v5 = vcombine.low %v3269_v17, %v3397_v39 }
 0x212   : > { %4169 = vrot.lane.b32.xlu1 %v4144_v2, %s4574_s15  ;;  %4183 = vrot.lane.b32.xlu0 %v4010_v18, %s4577_s22  ;;  %v3724_v15 = vrot.slane %v3717_v24, %v4893_v16  ;;  %v3850_v23 = vrot.slane %v3843_v5, %v4866_v63 }
 0x213   : > { %v3461_v48 = vpop.trf.xlu1  ;;  %v3301_v13 = vpop.trf.xlu0 }
 0x214   : > { %v3851_v59 = vcombine.low %v3333_v56, %v3461_v48  ;;  %v4350_v33 = vcombine.low %v3724_v15, %v3774_v25  ;;  %v4352_v35 = vcombine.high %v3724_v15, %v3774_v25 }
 0x216   : > { %4191 = vrot.lane.b32.xlu0 %v4011_v36, %s4578_s23  ;;  %v3858_v30 = vrot.slane %v3851_v59, %v4866_v63  ;;  %v4028_v4 = vrot.slane %v4350_v33, %v4866_v63  ;;  %v4044_v37 = vrot.slane %v4352_v35, %v4866_v63 }
 0x217   : > { %v3365_v41 = vpop.trf.xlu0 }
 0x218   : > { %v3793_v14 = vcombine.low %v3237_v49, %v3365_v41  ;;  %v3867_v45 = vcombine.low %v3850_v23, %v3858_v30  ;;  %v4093_v12 = vcombine.low %v4028_v4, %v4044_v37  ;;  %v4094_v61 = vcombine.high %v4028_v4, %v4044_v37 }
 0x21a   : > { %4199 = vrot.lane.b32.xlu0 %v4012_v21, %s4579_s24  ;;  %v3800_v55 = vrot.slane %v3793_v14, %v4866_v63  ;;  %v3874_v58 = vrot.slane %v3867_v45, %v4893_v16  ;;  %v4101_v50 = vrot.slane %v4093_v12, %v4893_v16  ;;  %v4108_v32 = vrot.slane %v4094_v61, %v4893_v16 }
 0x21b   : > { %v3429_v22 = vpop.trf.xlu0 }
 0x21c   : > { %v3801_v54 = vcombine.low %v3301_v13, %v3429_v22 }
 0x21e   : > { %v3808_v38 = vrot.slane %v3801_v54, %v4866_v63 }
 0x220   : > { %v3817_v28 = vcombine.low %v3800_v55, %v3808_v38 }
 0x222   : > { %v3824_v7 = vrot.slane %v3817_v28, %v4893_v16 }
 0x224   : > { %v4354_v60 = vcombine.low %v3824_v7, %v3874_v58  ;;  %v4356_v62 = vcombine.high %v3824_v7, %v3874_v58 }
 0x226   : > { %v4060_v17 = vrot.slane %v4354_v60, %v4866_v63  ;;  %v4076_v6 = vrot.slane %v4356_v62, %v4866_v63 }
 0x228   : > { %v4125_v57 = vcombine.low %v4060_v17, %v4076_v6  ;;  %v4126_v20 = vcombine.high %v4060_v17, %v4076_v6 }
 0x22a   : > { %v4133_v3 = vrot.slane %v4125_v57, %v4893_v16  ;;  %v4140_v27 = vrot.slane %v4126_v20, %v4893_v16 }
 0x22c   : > { %v4145_v56 = vcombine.low %v4101_v50, %v4133_v3  ;;  %v4146_v11 = vcombine.high %v4101_v50, %v4133_v3  ;;  %v4147_v19 = vcombine.low %v4108_v32, %v4140_v27  ;;  %v4148_v63 = vcombine.high %v4108_v32, %v4140_v27 }
 0x22e   : > { %4177 = vrot.lane.b32.xlu1 %v4145_v56, %s4576_s17 }
 0x232   : > { %4185 = vrot.lane.b32.xlu1 %v4146_v11, %s4577_s22 }
 0x236   : > { %4193 = vrot.lane.b32.xlu1 %v4147_v19, %s4578_s23 }
 0x23a   : > { %4201 = vrot.lane.b32.xlu1 %v4148_v63, %s4579_s24 }
 0x250   : > { %v4152_v42 = vpop.permute.xlu0 %4151 }
 0x251   : > { %v4206_v16 = vsel %vm4205_vm0, %v4005_v29, %v4152_v42 }
 0x254   : > { %v4168_v47 = vpop.permute.xlu0 %4167 }
 0x278   : > { %v4154_v39 = vpop.permute.xlu1 %4153 }
 0x279   : > { %v4207_v13 = vsel %vm4205_vm0, %v4141_v9, %v4154_v39 }
 0x27c   : > { %v4160_v1 = vpop.permute.xlu1 %4159 }
 0x27d   : > { %v4209_v2 = vsel %vm4208_vm1, %v4206_v16, %v4160_v1 }
 0x27e   : > { %v4212_v51 = vsel %vm4211_vm2, %v4209_v2, %v4168_v47 }
 0x280   : > { %v4176_v8 = vpop.permute.xlu0 %4175  ;;  %v4162_v40 = vpop.permute.xlu1 %4161 }
 0x281   : > { %v4215_v46 = vsel %vm4214_vm3, %v4212_v51, %v4176_v8  ;;  %v4210_v36 = vsel %vm4208_vm1, %v4207_v13, %v4162_v40 }
 0x284   : > { %v4184_v49 = vpop.permute.xlu0 %4183  ;;  %v4170_v26 = vpop.permute.xlu1 %4169 }
 0x285   : > { %v4218_v10 = vsel %vm4217_vm4, %v4215_v46, %v4184_v49  ;;  %v4213_v24 = vsel %vm4211_vm2, %v4210_v36, %v4170_v26 }
 0x288   : > { %v4192_v18 = vpop.permute.xlu0 %4191 }
 0x289   : > { %v4221_v34 = vsel %vm4220_vm5, %v4218_v10, %v4192_v18 }
 0x28c   : > { %v4200_v53 = vpop.permute.xlu0 %4199 }
 0x28d   : > { %v4224_v29 = vsel %vm4223_vm6, %v4221_v34, %v4200_v53 }
 0x28e   : > { %4227 = vst.msk [vmem:[%s153_s28] sm:$0xff] %vm4226_vm7, %v4224_v29 }
 0x2a0   : > { %v4178_v44 = vpop.permute.xlu1 %4177 }
 0x2a1   : > { %v4216_v59 = vsel %vm4214_vm3, %v4213_v24, %v4178_v44 }
 0x2a4   : > { %v4186_v48 = vpop.permute.xlu1 %4185 }
 0x2a5   : > { %v4219_v31 = vsel %vm4217_vm4, %v4216_v59, %v4186_v48 }
 0x2a8   : > { %v4194_v52 = vpop.permute.xlu1 %4193 }
 0x2a9   : > { %v4222_v43 = vsel %vm4220_vm5, %v4219_v31, %v4194_v52 }
 0x2ac   : > { %v4202_v0 = vpop.permute.xlu1 %4201 }
 0x2ad   : > { %v4225_v9 = vsel %vm4223_vm6, %v4222_v43, %v4202_v0 }
 0x2ae   : > { %4228 = vst.msk [vmem:[%s153_s28 + $0x8] sm:$0xff] %vm4226_vm7, %v4225_v9 }
 0x2af   : > { %4490 = shalt.err (!%p4487_p5)
}
 0x2b0   : > { %s4491_s15 = scalar_lea.hbm %s5433_s29, 256  ;;  %s4495_s22 = scalar_lea.hbm %s5486_s1, 512 }
 0x2b1   : > { %p4492_p4 = scmp.ne.s32.totalorder %s5433_s29, %s4491_s15  ;;  %p4496_p12 = scmp.lt.u32.totalorder %s5433_s29, %s5486_s1 }
 0x2b2   : > { %p4497_p1 = scmp.lt.u32.totalorder %s4495_s22, %s4491_s15  ;;  %p4499_p8 = scmp.lt.u32.totalorder %s4491_s15, %s5433_s29 }
 0x2b3   : > { %p4493_p7 = pnand %p4492_p4, %p5553_p9 }
 0x2b4   : > { %p4498_p3 = por %p4497_p1, %p4496_p12 }
 0x2b5   : > { %p4494_p10 = pneg %p4493_p7 }
 0x2b6   : > { %p4500_p11 = por %p4499_p8, %p4498_p3 }
 0x2b8   : > { %p4501_p0 = pnand %p4500_p11, %p4494_p10 }
 0x2ba   : > { %4504 = shalt.err (!%p4501_p0)
}
 0x2bb   : > { %s4581_s25 = smov 128  }
 0x2bc   : > { %4367 = dma.vmem_to_hbm [thread:$0]  (%p5553_p9), %s5426_s3, 256, %s5433_s29, %s4230_s9, %s4581_s25, %s4581_s25, %s4573_s13  }
 0x2bd PF: > { %s4259_s28 = sand.u32 1, %s4539_s6   ;;  %p5554_p6 = scmp.ne.s32.totalorder %s5512_s21, 0 }
 0x2be   : > { %p5555_p13 = scmp.ge.s32.totalorder %s4559_s11, 2  ;;  %s4260_s4 = scalar_lea.sflag [#allocation4], %s4259_s28 }
 0x2c0   : > { %p4374_p2 = pnand %p5555_p13, %p5554_p6 }
 0x2c2   : > { %4534 = dma.done.wait (!%p4374_p2), %s4260_s4, 256  }
 0x2c3   : > { %4536 = vsyncadd (!%p4374_p2), %s4260_s4, 4294967040  ;;  %s17_s11 = sadd.s32 1, %s4559_s11   ;;  %s5556_s6 = smov %s4543_s7 }
 0x2c4   : > { %p14_p5 = scmp.ge.s32.totalorder %s17_s11, 4   ;;  %s5557_s7 = smov %s4547_s8 }
 0x2c5   : > { %s5558_s8 = smov %s4648_s20  ;;  %s5559_s9 = smov %s4555_s10 }
 0x2c6   : > { %s5560_s10 = smov %s5562_s14  ;;  %16 = sbr.rel (!%p14_p5) target bundleno = 6 (0x6), region = 69 }
 0x2cd   :  { %4265 = vsyncpa [#allocation3], 1 }
 0x2ce   :  { %4267 = vsyncpa [#allocation3 + $0x1], 1 }
 0x2cf   :  { %4268 = vsyncpa [#allocation4], 1 }
 0x2d0   :  { %4270 = vsyncpa [#allocation4 + $0x1], 1 }

</bundles_post_ra>
